<compile_context>
chip_gen: v7x
topology: tpu7x:2x2x1
jax: 0.10.0
libtpu: 0.0.40
codegen_flags: <defaults>
</compile_context>

<pallas_src>
import functools
import math

import jax
import jax.numpy as jnp
from jax import lax
from jax.experimental import pallas as pl
from jax.experimental.pallas import tpu as pltpu


def msa_kernel(x_ref, wqkv_ref, bqkv_ref, wout_ref, bout_ref, o_ref, *,
               num_heads: int):
    """One grid step = full multi-head self-attention for one batch element."""
    S = x_ref.shape[1]
    E = x_ref.shape[2]
    head_dim = E // num_heads
    scale = 1.0 / math.sqrt(head_dim)
    mxu_dtype = wqkv_ref.dtype            # bf16 MXU operands, f32 accumulation

    # ---- input projection: (S, E) @ (E, 3E) -> (S, 3E), f32 accumulate ----
    qkv = jnp.dot(x_ref[0], wqkv_ref[...], preferred_element_type=jnp.float32)
    qkv = qkv + bqkv_ref[...]                               # f32 bias add

    # Hoisted out of the head loop: one scale + three large f32->bf16 casts
    # (instead of 3*num_heads small ones); frees VPU slots and drops the live
    # f32 q/k/v copies during the loop.
    q = (qkv[:, 0 * E:1 * E] * scale).astype(mxu_dtype)     # (S, E)
    k = qkv[:, 1 * E:2 * E].astype(mxu_dtype)               # (S, E)
    v = qkv[:, 2 * E:3 * E].astype(mxu_dtype)               # (S, E)

    # Contract the last dims of q_h and k_h directly (== q_h @ k_h^T) -- no
    # explicit per-head transpose, the MXU consumes the operand as-is.
    qk_dims = (((1,), (1,)), ((), ()))

    # ---- per-head attention, output projection folded in per head ----
    out = jnp.zeros((S, E), jnp.float32)
    for h in range(num_heads):                              # static unroll
        lo = h * head_dim
        q_h = q[:, lo:lo + head_dim]                        # (S, Dh) bf16
        k_h = k[:, lo:lo + head_dim]                        # (S, Dh) bf16
        v_h = v[:, lo:lo + head_dim]                        # (S, Dh) bf16

        s_h = lax.dot_general(q_h, k_h, qk_dims,
                              preferred_element_type=jnp.float32)   # (S, S)
        m_h = jnp.max(s_h, axis=-1, keepdims=True)
        p_h = jnp.exp(s_h - m_h)
        # EUP approximate reciprocal: softmax rows sum to ~1 (documented
        # precision tradeoff, within the stated tolerance).
        p_h = p_h * pl.reciprocal(jnp.sum(p_h, axis=-1, keepdims=True),
                                  approx=True)
        # TODO(synk): attention dropout omitted (attn_dropout=0.0 / eval);
        # training dropout would use pltpu.prng_seed + pltpu.prng_random_bits.
        ctx_h = jnp.dot(p_h.astype(mxu_dtype), v_h,
                        preferred_element_type=jnp.float32)          # (S, Dh)
        # Fold this head straight into the output projection (no head concat).
        out = out + jnp.dot(ctx_h.astype(mxu_dtype),
                            wout_ref[lo:lo + head_dim, :],
                            preferred_element_type=jnp.float32)      # (S, E)

    out = out + bout_ref[...]
    o_ref[0] = out.astype(o_ref.dtype)


def _derive_vmem_limit(seq, embed, x_itemsize, mxu_itemsize=2):
    """Shape-derived scoped-VMEM budget (bytes), clamped to [32 MiB, 64 MiB]."""
    e3 = 3 * embed
    resident = 2 * (embed * e3 + embed * embed) * mxu_itemsize   # 2x-buffered W
    resident += 2 * (e3 + embed) * 4                             # f32 biases
    streamed = 2 * seq * embed * mxu_itemsize + 2 * seq * embed * x_itemsize
    temps = (seq * e3 * 4                       # f32 qkv
             + 3 * seq * embed * mxu_itemsize   # bf16 q/k/v
             + 2 * seq * seq * 4                # one head's scores + probs
             + 2 * seq * embed * 4)             # f32 output accumulator slack
    need = resident + streamed + temps
    return int(min(64 << 20, max(32 << 20, 2 * need)))


def msa_forward(x, w_in, b_in, w_out, b_out, *, num_heads,
                mxu_dtype=jnp.bfloat16):
    """Fused MultiheadAttention forward.

    x:     (B, S, E)
    w_in:  (E, 3E)   == torch in_proj_weight.T
    b_in:  (3E,)
    w_out: (E, E)    == torch out_proj.weight.T
    b_out: (E,)
    """
    B, S, E = x.shape
    assert E % num_heads == 0, "embed_dim must divide num_heads"
    assert w_in.shape == (E, 3 * E)
    assert w_out.shape == (E, E)

    # bf16 streamed input + resident weights: halves HBM traffic and VMEM
    # footprint; all accumulation stays f32 in-kernel.
    x_c = x.astype(mxu_dtype)
    w_in_c = w_in.astype(mxu_dtype)
    w_out_c = w_out.astype(mxu_dtype)
    b_in_2d = b_in.reshape(1, 3 * E).astype(jnp.float32)
    b_out_2d = b_out.reshape(1, E).astype(jnp.float32)

    flops = (2 * B * S * E * 3 * E        # input projection
             + 4 * B * S * S * E          # q@k^T and p@v across all heads
             + 2 * B * S * E * E)         # output projection
    cost = pl.CostEstimate(
        flops=flops,
        transcendentals=B * num_heads * S * S,               # softmax exp
        bytes_accessed=(x_c.size * x_c.dtype.itemsize        # x in (bf16)
                        + B * S * E * x.dtype.itemsize       # out
                        + w_in_c.size * w_in_c.dtype.itemsize
                        + w_out_c.size * w_out_c.dtype.itemsize
                        + (b_in_2d.size + b_out_2d.size) * 4))

    kernel = functools.partial(msa_kernel, num_heads=num_heads)

    # TODO(synk): mark the constant-index weight/bias specs single-buffered
    # (pipeline_mode=pl.Buffered(1)) to drop one resident W copy on v7x.
    # TODO(synk): for very long sequences (S >~ 2k) switch to a KV-tiled
    # online-softmax (flash-style) inner loop to bound VMEM.
    out = pl.pallas_call(
        kernel,
        out_shape=jax.ShapeDtypeStruct((B, S, E), x.dtype),
        grid_spec=pltpu.PrefetchScalarGridSpec(
            num_scalar_prefetch=0,
            grid=(B,),
            in_specs=[
                pl.BlockSpec((1, S, E), lambda b: (b, 0, 0)),   # x (streamed)
                pl.BlockSpec((E, 3 * E), lambda b: (0, 0)),     # W_in  resident
                pl.BlockSpec((1, 3 * E), lambda b: (0, 0)),     # b_in
                pl.BlockSpec((E, E), lambda b: (0, 0)),         # W_out resident
                pl.BlockSpec((1, E), lambda b: (0, 0)),         # b_out
            ],
            out_specs=pl.BlockSpec((1, S, E), lambda b: (b, 0, 0)),
        ),
        compiler_params=pltpu.CompilerParams(
            dimension_semantics=("parallel",),
            vmem_limit_bytes=_derive_vmem_limit(S, E, x.dtype.itemsize),
        ),
        cost_estimate=cost,
    )(x_c, w_in_c, b_in_2d, w_out_c, b_out_2d)
    return out


if __name__ == "__main__":
    # Small shapes consistent with the module (ViT-Base scaled down:
    # embed_dim 768 -> 32, num_heads 12 -> 4, seq 197 -> 8).  Real ViT shapes
    # (E=768) give lane-dense (multiple-of-128) head slices and outputs.
    batch, seq, embed_dim, num_heads = 2, 8, 32, 4

    key = jax.random.PRNGKey(0)
    kx, kwi, kbi, kwo, kbo = jax.random.split(key, 5)

    x = jax.random.normal(kx, (batch, seq, embed_dim), dtype=jnp.float32)
    # Synthetic parameters; layout == torch in_proj_weight.T / out_proj.weight.T.
    w_in = jax.random.uniform(kwi, (embed_dim, 3 * embed_dim), jnp.float32,
                              minval=-0.1, maxval=0.1)
    b_in = jax.random.uniform(kbi, (3 * embed_dim,), jnp.float32,
                              minval=-0.1, maxval=0.1)
    w_out = jax.random.uniform(kwo, (embed_dim, embed_dim), jnp.float32,
                               minval=-0.1, maxval=0.1)
    b_out = jax.random.uniform(kbo, (embed_dim,), jnp.float32,
                               minval=-0.1, maxval=0.1)

    y = msa_forward(x, w_in, b_in, w_out, b_out, num_heads=num_heads)
    jax.block_until_ready(y)

    # Pure-JAX f32 reference of torch.nn.MultiheadAttention forward.
    def reference(x, w_in, b_in, w_out, b_out, num_heads):
        B, S, E = x.shape
        Dh = E // num_heads
        qkv = x @ w_in + b_in
        q, k, v = jnp.split(qkv, 3, axis=-1)
        q = q.reshape(B, S, num_heads, Dh).transpose(0, 2, 1, 3) / math.sqrt(Dh)
        k = k.reshape(B, S, num_heads, Dh).transpose(0, 2, 1, 3)
        v = v.reshape(B, S, num_heads, Dh).transpose(0, 2, 1, 3)
        p = jax.nn.softmax(jnp.einsum('bhqd,bhkd->bhqk', q, k), axis=-1)
        ctx = jnp.einsum('bhqk,bhkd->bhqd', p, v)
        ctx = ctx.transpose(0, 2, 1, 3).reshape(B, S, E)
        return ctx @ w_out + b_out

    y_ref = reference(x, w_in, b_in, w_out, b_out, num_heads)
    assert y.shape == (batch, seq, embed_dim)
    # Tolerance reflects bf16 MXU operands / bf16-streamed x (f32 accumulation).
    assert jnp.allclose(y, y_ref, atol=5e-2, rtol=5e-2), (
        float(jnp.max(jnp.abs(y - y_ref))))

    print("KERNEL_OK")
</pallas_src>

<mosaic_0001>
module attributes {stable_mosaic.version = 11 : i64} {
  func.func @msa_kernel(%arg0: i32, %arg1: memref<1x8x32xbf16, #tpu.memory_space<vmem>>, %arg2: memref<32x96xbf16, #tpu.memory_space<vmem>>, %arg3: memref<1x96xf32, #tpu.memory_space<vmem>>, %arg4: memref<32x32xbf16, #tpu.memory_space<vmem>>, %arg5: memref<1x32xf32, #tpu.memory_space<vmem>>, %arg6: memref<1x8x32xf32, #tpu.memory_space<vmem>>) attributes {dimension_semantics = [#tpu.dimension_semantics<parallel>], iteration_bounds = array<i64: 2>, scalar_prefetch = 0 : i64, scratch_operands = 0 : i64, tpu.core_type = #tpu.core_type<tc>, window_params = [{transform_indices = @transform_0, window_bounds = array<i64: 1, 8, 32>}, {pipeline_mode = #tpu.pipeline_mode<synchronous>, transform_indices = @transform_1, window_bounds = array<i64: 32, 96>}, {pipeline_mode = #tpu.pipeline_mode<synchronous>, transform_indices = @transform_2, window_bounds = array<i64: 1, 96>}, {pipeline_mode = #tpu.pipeline_mode<synchronous>, transform_indices = @transform_3, window_bounds = array<i64: 32, 32>}, {pipeline_mode = #tpu.pipeline_mode<synchronous>, transform_indices = @transform_4, window_bounds = array<i64: 1, 32>}, {transform_indices = @transform_5, window_bounds = array<i64: 1, 8, 32>}]} {
    %c0 = arith.constant 0 : index
    %c0_0 = arith.constant 0 : index
    %c0_1 = arith.constant 0 : index
    %0 = vector.load %arg1[%c0, %c0_0, %c0_1] : memref<1x8x32xbf16, #tpu.memory_space<vmem>>, vector<1x8x32xbf16>
    %1 = vector.shape_cast %0 : vector<1x8x32xbf16> to vector<8x32xbf16>
    %c0_2 = arith.constant 0 : index
    %c0_3 = arith.constant 0 : index
    %2 = vector.load %arg2[%c0_2, %c0_3] : memref<32x96xbf16, #tpu.memory_space<vmem>>, vector<32x96xbf16>
    %cst = arith.constant dense<0.000000e+00> : vector<8x96xf32>
    %3 = tpu.matmul %1, %2, %cst {dimension_numbers = #tpu.dot_dimension_numbers<[1], [0], [0], [1], [0, 0, 1, 1], [], []>} : vector<8x32xbf16>, vector<32x96xbf16>, vector<8x96xf32> -> vector<8x96xf32>
    %c0_4 = arith.constant 0 : index
    %c0_5 = arith.constant 0 : index
    %4 = vector.load %arg3[%c0_4, %c0_5] : memref<1x96xf32, #tpu.memory_space<vmem>>, vector<1x96xf32>
    %5 = vector.broadcast %4 : vector<1x96xf32> to vector<8x96xf32>
    %6 = arith.addf %3, %5 : vector<8x96xf32>
    %7 = vector.extract_strided_slice %6 {offsets = [0, 0], sizes = [8, 32], strides = [1, 1]} : vector<8x96xf32> to vector<8x32xf32>
    %cst_6 = arith.constant 0.353553385 : f32
    %8 = vector.broadcast %cst_6 : f32 to vector<8x32xf32>
    %9 = arith.mulf %7, %8 : vector<8x32xf32>
    %10 = arith.truncf %9 : vector<8x32xf32> to vector<8x32xbf16>
    %11 = vector.extract_strided_slice %6 {offsets = [0, 32], sizes = [8, 32], strides = [1, 1]} : vector<8x96xf32> to vector<8x32xf32>
    %12 = arith.truncf %11 : vector<8x32xf32> to vector<8x32xbf16>
    %13 = vector.extract_strided_slice %6 {offsets = [0, 64], sizes = [8, 32], strides = [1, 1]} : vector<8x96xf32> to vector<8x32xf32>
    %14 = arith.truncf %13 : vector<8x32xf32> to vector<8x32xbf16>
    %cst_7 = arith.constant 0.000000e+00 : f32
    %15 = vector.broadcast %cst_7 : f32 to vector<8x32xf32>
    %16 = vector.extract_strided_slice %10 {offsets = [0, 0], sizes = [8, 8], strides = [1, 1]} : vector<8x32xbf16> to vector<8x8xbf16>
    %17 = vector.extract_strided_slice %12 {offsets = [0, 0], sizes = [8, 8], strides = [1, 1]} : vector<8x32xbf16> to vector<8x8xbf16>
    %18 = vector.extract_strided_slice %14 {offsets = [0, 0], sizes = [8, 8], strides = [1, 1]} : vector<8x32xbf16> to vector<8x8xbf16>
    %cst_8 = arith.constant dense<0.000000e+00> : vector<8x8xf32>
    %19 = tpu.matmul %16, %17, %cst_8 {dimension_numbers = #tpu.dot_dimension_numbers<[1], [1], [0], [0], [0, 0, 1, 0], [], []>} : vector<8x8xbf16>, vector<8x8xbf16>, vector<8x8xf32> -> vector<8x8xf32>
    %cst_9 = arith.constant dense<0xFF800000> : vector<8xf32>
    %20 = vector.multi_reduction <maximumf>, %19, %cst_9 [1] : vector<8x8xf32> to vector<8xf32>
    %21 = vector.shape_cast %20 : vector<8xf32> to vector<8x1xf32>
    %22 = vector.broadcast %21 : vector<8x1xf32> to vector<8x8xf32>
    %23 = arith.subf %19, %22 : vector<8x8xf32>
    %24 = math.exp %23 : vector<8x8xf32>
    %cst_10 = arith.constant dense<0.000000e+00> : vector<8xf32>
    %25 = vector.multi_reduction <add>, %24, %cst_10 [1] : vector<8x8xf32> to vector<8xf32>
    %26 = vector.shape_cast %25 : vector<8xf32> to vector<8x1xf32>
    %27 = tpu.reciprocal %26 {approx = true} : vector<8x1xf32> -> vector<8x1xf32>
    %28 = vector.broadcast %27 : vector<8x1xf32> to vector<8x8xf32>
    %29 = arith.mulf %24, %28 : vector<8x8xf32>
    %30 = arith.truncf %29 : vector<8x8xf32> to vector<8x8xbf16>
    %cst_11 = arith.constant dense<0.000000e+00> : vector<8x8xf32>
    %31 = tpu.matmul %30, %18, %cst_11 {dimension_numbers = #tpu.dot_dimension_numbers<[1], [0], [0], [1], [0, 0, 1, 1], [], []>} : vector<8x8xbf16>, vector<8x8xbf16>, vector<8x8xf32> -> vector<8x8xf32>
    %32 = arith.truncf %31 : vector<8x8xf32> to vector<8x8xbf16>
    %c0_12 = arith.constant 0 : index
    %c0_13 = arith.constant 0 : index
    %33 = vector.load %arg4[%c0_12, %c0_13] : memref<32x32xbf16, #tpu.memory_space<vmem>>, vector<8x32xbf16>
    %cst_14 = arith.constant dense<0.000000e+00> : vector<8x32xf32>
    %34 = tpu.matmul %32, %33, %cst_14 {dimension_numbers = #tpu.dot_dimension_numbers<[1], [0], [0], [1], [0, 0, 1, 1], [], []>} : vector<8x8xbf16>, vector<8x32xbf16>, vector<8x32xf32> -> vector<8x32xf32>
    %35 = arith.addf %15, %34 : vector<8x32xf32>
    %36 = vector.extract_strided_slice %10 {offsets = [0, 8], sizes = [8, 8], strides = [1, 1]} : vector<8x32xbf16> to vector<8x8xbf16>
    %37 = vector.extract_strided_slice %12 {offsets = [0, 8], sizes = [8, 8], strides = [1, 1]} : vector<8x32xbf16> to vector<8x8xbf16>
    %38 = vector.extract_strided_slice %14 {offsets = [0, 8], sizes = [8, 8], strides = [1, 1]} : vector<8x32xbf16> to vector<8x8xbf16>
    %cst_15 = arith.constant dense<0.000000e+00> : vector<8x8xf32>
    %39 = tpu.matmul %36, %37, %cst_15 {dimension_numbers = #tpu.dot_dimension_numbers<[1], [1], [0], [0], [0, 0, 1, 0], [], []>} : vector<8x8xbf16>, vector<8x8xbf16>, vector<8x8xf32> -> vector<8x8xf32>
    %cst_16 = arith.constant dense<0xFF800000> : vector<8xf32>
    %40 = vector.multi_reduction <maximumf>, %39, %cst_16 [1] : vector<8x8xf32> to vector<8xf32>
    %41 = vector.shape_cast %40 : vector<8xf32> to vector<8x1xf32>
    %42 = vector.broadcast %41 : vector<8x1xf32> to vector<8x8xf32>
    %43 = arith.subf %39, %42 : vector<8x8xf32>
    %44 = math.exp %43 : vector<8x8xf32>
    %cst_17 = arith.constant dense<0.000000e+00> : vector<8xf32>
    %45 = vector.multi_reduction <add>, %44, %cst_17 [1] : vector<8x8xf32> to vector<8xf32>
    %46 = vector.shape_cast %45 : vector<8xf32> to vector<8x1xf32>
    %47 = tpu.reciprocal %46 {approx = true} : vector<8x1xf32> -> vector<8x1xf32>
    %48 = vector.broadcast %47 : vector<8x1xf32> to vector<8x8xf32>
    %49 = arith.mulf %44, %48 : vector<8x8xf32>
    %50 = arith.truncf %49 : vector<8x8xf32> to vector<8x8xbf16>
    %cst_18 = arith.constant dense<0.000000e+00> : vector<8x8xf32>
    %51 = tpu.matmul %50, %38, %cst_18 {dimension_numbers = #tpu.dot_dimension_numbers<[1], [0], [0], [1], [0, 0, 1, 1], [], []>} : vector<8x8xbf16>, vector<8x8xbf16>, vector<8x8xf32> -> vector<8x8xf32>
    %52 = arith.truncf %51 : vector<8x8xf32> to vector<8x8xbf16>
    %c8 = arith.constant 8 : index
    %c0_19 = arith.constant 0 : index
    %53 = vector.load %arg4[%c8, %c0_19] : memref<32x32xbf16, #tpu.memory_space<vmem>>, vector<8x32xbf16>
    %cst_20 = arith.constant dense<0.000000e+00> : vector<8x32xf32>
    %54 = tpu.matmul %52, %53, %cst_20 {dimension_numbers = #tpu.dot_dimension_numbers<[1], [0], [0], [1], [0, 0, 1, 1], [], []>} : vector<8x8xbf16>, vector<8x32xbf16>, vector<8x32xf32> -> vector<8x32xf32>
    %55 = arith.addf %35, %54 : vector<8x32xf32>
    %56 = vector.extract_strided_slice %10 {offsets = [0, 16], sizes = [8, 8], strides = [1, 1]} : vector<8x32xbf16> to vector<8x8xbf16>
    %57 = vector.extract_strided_slice %12 {offsets = [0, 16], sizes = [8, 8], strides = [1, 1]} : vector<8x32xbf16> to vector<8x8xbf16>
    %58 = vector.extract_strided_slice %14 {offsets = [0, 16], sizes = [8, 8], strides = [1, 1]} : vector<8x32xbf16> to vector<8x8xbf16>
    %cst_21 = arith.constant dense<0.000000e+00> : vector<8x8xf32>
    %59 = tpu.matmul %56, %57, %cst_21 {dimension_numbers = #tpu.dot_dimension_numbers<[1], [1], [0], [0], [0, 0, 1, 0], [], []>} : vector<8x8xbf16>, vector<8x8xbf16>, vector<8x8xf32> -> vector<8x8xf32>
    %cst_22 = arith.constant dense<0xFF800000> : vector<8xf32>
    %60 = vector.multi_reduction <maximumf>, %59, %cst_22 [1] : vector<8x8xf32> to vector<8xf32>
    %61 = vector.shape_cast %60 : vector<8xf32> to vector<8x1xf32>
    %62 = vector.broadcast %61 : vector<8x1xf32> to vector<8x8xf32>
    %63 = arith.subf %59, %62 : vector<8x8xf32>
    %64 = math.exp %63 : vector<8x8xf32>
    %cst_23 = arith.constant dense<0.000000e+00> : vector<8xf32>
    %65 = vector.multi_reduction <add>, %64, %cst_23 [1] : vector<8x8xf32> to vector<8xf32>
    %66 = vector.shape_cast %65 : vector<8xf32> to vector<8x1xf32>
    %67 = tpu.reciprocal %66 {approx = true} : vector<8x1xf32> -> vector<8x1xf32>
    %68 = vector.broadcast %67 : vector<8x1xf32> to vector<8x8xf32>
    %69 = arith.mulf %64, %68 : vector<8x8xf32>
    %70 = arith.truncf %69 : vector<8x8xf32> to vector<8x8xbf16>
    %cst_24 = arith.constant dense<0.000000e+00> : vector<8x8xf32>
    %71 = tpu.matmul %70, %58, %cst_24 {dimension_numbers = #tpu.dot_dimension_numbers<[1], [0], [0], [1], [0, 0, 1, 1], [], []>} : vector<8x8xbf16>, vector<8x8xbf16>, vector<8x8xf32> -> vector<8x8xf32>
    %72 = arith.truncf %71 : vector<8x8xf32> to vector<8x8xbf16>
    %c16 = arith.constant 16 : index
    %c0_25 = arith.constant 0 : index
    %73 = vector.load %arg4[%c16, %c0_25] : memref<32x32xbf16, #tpu.memory_space<vmem>>, vector<8x32xbf16>
    %cst_26 = arith.constant dense<0.000000e+00> : vector<8x32xf32>
    %74 = tpu.matmul %72, %73, %cst_26 {dimension_numbers = #tpu.dot_dimension_numbers<[1], [0], [0], [1], [0, 0, 1, 1], [], []>} : vector<8x8xbf16>, vector<8x32xbf16>, vector<8x32xf32> -> vector<8x32xf32>
    %75 = arith.addf %55, %74 : vector<8x32xf32>
    %76 = vector.extract_strided_slice %10 {offsets = [0, 24], sizes = [8, 8], strides = [1, 1]} : vector<8x32xbf16> to vector<8x8xbf16>
    %77 = vector.extract_strided_slice %12 {offsets = [0, 24], sizes = [8, 8], strides = [1, 1]} : vector<8x32xbf16> to vector<8x8xbf16>
    %78 = vector.extract_strided_slice %14 {offsets = [0, 24], sizes = [8, 8], strides = [1, 1]} : vector<8x32xbf16> to vector<8x8xbf16>
    %cst_27 = arith.constant dense<0.000000e+00> : vector<8x8xf32>
    %79 = tpu.matmul %76, %77, %cst_27 {dimension_numbers = #tpu.dot_dimension_numbers<[1], [1], [0], [0], [0, 0, 1, 0], [], []>} : vector<8x8xbf16>, vector<8x8xbf16>, vector<8x8xf32> -> vector<8x8xf32>
    %cst_28 = arith.constant dense<0xFF800000> : vector<8xf32>
    %80 = vector.multi_reduction <maximumf>, %79, %cst_28 [1] : vector<8x8xf32> to vector<8xf32>
    %81 = vector.shape_cast %80 : vector<8xf32> to vector<8x1xf32>
    %82 = vector.broadcast %81 : vector<8x1xf32> to vector<8x8xf32>
    %83 = arith.subf %79, %82 : vector<8x8xf32>
    %84 = math.exp %83 : vector<8x8xf32>
    %cst_29 = arith.constant dense<0.000000e+00> : vector<8xf32>
    %85 = vector.multi_reduction <add>, %84, %cst_29 [1] : vector<8x8xf32> to vector<8xf32>
    %86 = vector.shape_cast %85 : vector<8xf32> to vector<8x1xf32>
    %87 = tpu.reciprocal %86 {approx = true} : vector<8x1xf32> -> vector<8x1xf32>
    %88 = vector.broadcast %87 : vector<8x1xf32> to vector<8x8xf32>
    %89 = arith.mulf %84, %88 : vector<8x8xf32>
    %90 = arith.truncf %89 : vector<8x8xf32> to vector<8x8xbf16>
    %cst_30 = arith.constant dense<0.000000e+00> : vector<8x8xf32>
    %91 = tpu.matmul %90, %78, %cst_30 {dimension_numbers = #tpu.dot_dimension_numbers<[1], [0], [0], [1], [0, 0, 1, 1], [], []>} : vector<8x8xbf16>, vector<8x8xbf16>, vector<8x8xf32> -> vector<8x8xf32>
    %92 = arith.truncf %91 : vector<8x8xf32> to vector<8x8xbf16>
    %c24 = arith.constant 24 : index
    %c0_31 = arith.constant 0 : index
    %93 = vector.load %arg4[%c24, %c0_31] : memref<32x32xbf16, #tpu.memory_space<vmem>>, vector<8x32xbf16>
    %cst_32 = arith.constant dense<0.000000e+00> : vector<8x32xf32>
    %94 = tpu.matmul %92, %93, %cst_32 {dimension_numbers = #tpu.dot_dimension_numbers<[1], [0], [0], [1], [0, 0, 1, 1], [], []>} : vector<8x8xbf16>, vector<8x32xbf16>, vector<8x32xf32> -> vector<8x32xf32>
    %95 = arith.addf %75, %94 : vector<8x32xf32>
    %c0_33 = arith.constant 0 : index
    %c0_34 = arith.constant 0 : index
    %96 = vector.load %arg5[%c0_33, %c0_34] : memref<1x32xf32, #tpu.memory_space<vmem>>, vector<1x32xf32>
    %97 = vector.broadcast %96 : vector<1x32xf32> to vector<8x32xf32>
    %98 = arith.addf %95, %97 : vector<8x32xf32>
    %c0_35 = arith.constant 0 : index
    %c0_36 = arith.constant 0 : index
    %c0_37 = arith.constant 0 : index
    %99 = vector.load %arg6[%c0_35, %c0_36, %c0_37] : memref<1x8x32xf32, #tpu.memory_space<vmem>>, vector<1x8x32xf32>
    %100 = vector.shape_cast %99 : vector<1x8x32xf32> to vector<8x32xf32>
    %101 = vector.shape_cast %98 : vector<8x32xf32> to vector<1x8x32xf32>
    tpu.vector_store %arg6[%c0_35, %c0_36, %c0_37], %101 {strides = array<i32>} : memref<1x8x32xf32, #tpu.memory_space<vmem>>, vector<1x8x32xf32>,
    return
  }
  func.func @transform_0(%arg0: i32) -> (i32, i32, i32) {
    %c0_i32 = arith.constant 0 : i32
    %c0_i32_0 = arith.constant 0 : i32
    %c0_i32_1 = arith.constant 0 : i32
    return %arg0, %c0_i32, %c0_i32_0 : i32, i32, i32
  }
  func.func @transform_1(%arg0: i32) -> (i32, i32) {
    %c0_i32 = arith.constant 0 : i32
    %c0_i32_0 = arith.constant 0 : i32
    %c0_i32_1 = arith.constant 0 : i32
    return %c0_i32, %c0_i32_0 : i32, i32
  }
  func.func @transform_2(%arg0: i32) -> (i32, i32) {
    %c0_i32 = arith.constant 0 : i32
    %c0_i32_0 = arith.constant 0 : i32
    %c0_i32_1 = arith.constant 0 : i32
    return %c0_i32, %c0_i32_0 : i32, i32
  }
  func.func @transform_3(%arg0: i32) -> (i32, i32) {
    %c0_i32 = arith.constant 0 : i32
    %c0_i32_0 = arith.constant 0 : i32
    %c0_i32_1 = arith.constant 0 : i32
    return %c0_i32, %c0_i32_0 : i32, i32
  }
  func.func @transform_4(%arg0: i32) -> (i32, i32) {
    %c0_i32 = arith.constant 0 : i32
    %c0_i32_0 = arith.constant 0 : i32
    %c0_i32_1 = arith.constant 0 : i32
    return %c0_i32, %c0_i32_0 : i32, i32
  }
  func.func @transform_5(%arg0: i32) -> (i32, i32, i32) {
    %c0_i32 = arith.constant 0 : i32
    %c0_i32_0 = arith.constant 0 : i32
    %c0_i32_1 = arith.constant 0 : i32
    return %arg0, %c0_i32, %c0_i32_0 : i32, i32, i32
  }
}

</mosaic_0001>

<bundles_post_ra>
// kernel: tpu_custom_call.1
= control target key start
LH: loop header
LB: loop body
LE: loop exit
PB: predicated region body
PF: predicated region fallthrough
CT: control target
= control target key end

     0   :  { %10 = vsyncpa [#allocation3], 0  ;;  %s1865_s0 = inlined_call_operand.hbm [shape: bf16[2,8,32], index: 0, kind: input, shape index: {}]   ;;  %s1866_s1 = inlined_call_operand.hbm [shape: bf16[32,96], index: 1, kind: input, shape index: {}]   ;;  %s1867_s2 = inlined_call_operand.vmem [shape: f32[1,96], index: 2, kind: input, shape index: {}]   ;;  %s1868_s3 = inlined_call_operand.hbm [shape: bf16[32,32], index: 3, kind: input, shape index: {}]   ;;  %s1869_s4 = inlined_call_operand.vmem [shape: f32[1,32], index: 4, kind: input, shape index: {}]   ;;  %s1870_s5 = inlined_call_operand.hbm [shape: f32[2,8,32], index: 5, kind: output, shape index: {}]  }
   0x1   :  { %12 = vsyncpa [#allocation3 + $0x1], 0 }
   0x2   :  { %13 = vsyncpa [#allocation6], 0 }
   0x3   :  { %14 = vsyncpa [#allocation4], 0 }
   0x4   :  { %16 = vsyncpa [#allocation4 + $0x1], 0  ;;  %s1536_s18 = smov 0   ;;  %s1538_s19 = smov 0  }
   0x5   :  { %s1540_s20 = smov 0   ;;  %s1542_s21 = smov 0  }
   0x6 LB: > { %s1557_s22 = sadd.s32 4294967295, %s1485_s21   ;;  %s1089_s23 = sadd.s32 4294967294, %s1485_s21   ;;  %s1485_s21 = sphi %s1542_s21, %s1890_s21   ;;  %s1481_s20 = sphi %s1540_s20, %s1889_s20   ;;  %s1477_s19 = sphi %s1538_s19, %s1888_s19   ;;  %s1473_s18 = sphi %s1536_s18, %s1887_s18  }
   0x7   : > { %p42_p0 = scmp.ne.s32.totalorder %s1477_s19, %s1473_s18  ;;  %p1871_p1 = scmp.eq.s32.totalorder %s1557_s22, 0 }
   0x8   : > { %p156_p3 = scmp.eq.s32.totalorder %s1089_s23, 1  ;;  %p1090_p5 = scmp.ge.s32.totalorder %s1485_s21, 1 }
   0x9   : > { %p1566_p4 = por %p1871_p1, %p42_p0  ;;  %p163_p7 = scmp.lt.s32.totalorder %s1485_s21, 3 }
   0xa   : > { %p1571_p6 = por %p156_p3, %p42_p0  ;;  %s1487_s27 = smov [#allocation5]  }
   0xb   : > { %s1874_s24 = scalar_select %p1566_p4, 1, 0 }
   0xc   : > { %s1875_s25 = scalar_select %p1571_p6, 1, 0 }
   0xd   : > { %p1576_p8 = pnand %p1090_p5, %p163_p7  ;;  %s175_s28 = sshll.u32 %s1487_s27, 4  ;;  %s1580_s28 = int_to_ptr.vmem [resolvable:$true] %s175_s28 }
   0xe   : > { %s1488_s30 = smov [#allocation7]   ;;  %s1329_s9 = scalar_lea.hbm %s1866_s1, 256 }
   0xf   : > { %p1241_p9 = pneg %p1576_p8  ;;  %s191_s6 = sshll.u32 %s1488_s30, 4  ;;  %s1591_s6 = int_to_ptr.vmem [resolvable:$true] %s191_s6 }
  0x10   : > { %p1330_p12 = scmp.ne.s32.totalorder %s1866_s1, %s1329_s9  ;;  %p1336_p5 = scmp.lt.u32.totalorder %s1329_s9, %s1866_s1 }
  0x11   : > { %p1587_p11 = pnand %p1241_p9, %p1871_p1 }
  0x13   : > { %p1331_p13 = pneg %p1587_p11 }
  0x15   : > { %p1332_p0 = pnand %p1331_p13, %p1330_p12 }
  0x17   : > { %p1333_p3 = pneg %p1332_p0 }
  0x19   : > { %p1338_p7 = pnand %p1336_p5, %p1333_p3 }
  0x1b   : > { %1341 = shalt.err (!%p1338_p7)
}
  0x1c   : > { %s1342_s14 = scalar_lea.vmem %s1580_s28, 256  ;;  %p1350_p2 = scmp.lt.s32.totalorder %s1580_s28, %s1580_s28 }
  0x1d   : > { %p1343_p9 = scmp.ne.s32.totalorder %s1580_s28, %s1342_s14  ;;  %p1351_p12 = scmp.lt.s32.totalorder %s1342_s14, %s1342_s14 }
  0x1f   : > { %p1345_p10 = pnand %p1343_p9, %p1331_p13  ;;  %p1352_p0 = por %p1351_p12, %p1350_p2 }
  0x21   : > { %p1346_p1 = pneg %p1345_p10 }
  0x23   : > { %p1353_p6 = pnand %p1352_p0, %p1346_p1 }
  0x25   : > { %1356 = shalt.err (!%p1353_p6)
}
  0x26   : > { %s1489_s15 = smov 64   ;;  %s1490_s16 = smov 4  }
  0x27   : > { %1244 = dma.hbm_to_vmem [thread:$0]  (!%p1587_p11), %s1866_s1, 256, %s1580_s28, [#allocation6], %s1489_s15, %s1489_s15, %s1490_s16  }
  0x28   : > { %s1357_s7 = scalar_lea.hbm %s1868_s3, 256 }
  0x29   : > { %p1358_p2 = scmp.ne.s32.totalorder %s1868_s3, %s1357_s7  ;;  %p1364_p10 = scmp.lt.u32.totalorder %s1357_s7, %s1868_s3 }
  0x2b   : > { %p1360_p1 = pnand %p1358_p2, %p1331_p13 }
  0x2d   : > { %p1361_p6 = pneg %p1360_p1 }
  0x2f   : > { %p1366_p3 = pnand %p1364_p10, %p1361_p6 }
  0x31   : > { %1369 = shalt.err (!%p1366_p3)
}
  0x32   : > { %s1370_s28 = scalar_lea.vmem %s1591_s6, 256  ;;  %p1378_p12 = scmp.lt.s32.totalorder %s1591_s6, %s1591_s6 }
  0x33   : > { %p1371_p5 = scmp.ne.s32.totalorder %s1591_s6, %s1370_s28  ;;  %p1379_p0 = scmp.lt.s32.totalorder %s1370_s28, %s1370_s28 }
  0x35   : > { %p1373_p7 = pnand %p1371_p5, %p1331_p13  ;;  %p1380_p2 = por %p1379_p0, %p1378_p12 }
  0x37   : > { %p1374_p9 = pneg %p1373_p7 }
  0x39   : > { %p1381_p1 = pnand %p1380_p2, %p1374_p9 }
  0x3b   : > { %1384 = shalt.err (!%p1381_p1)
}
  0x3c   : > { %1247 = dma.hbm_to_vmem [thread:$0]  (!%p1587_p11), %s1868_s3, 256, %s1591_s6, [#allocation6], %s1489_s15, %s1489_s15, %s1490_s16  }
  0x3d   : > { %s1646_s14 = sadd.s32 1, %s1485_s21   ;;  %s29_s29 = sadd.s32 1, %s1481_s20 }
  0x3e   : > { %s26_s17 = ssub.s32 %s1485_s21, %s1646_s14  ;;  %p36_p13 = scmp.ne.s32.totalorder %s1481_s20, %s1477_s19 }
  0x3f   : > { %p27_p6 = scmp.eq.s32.totalorder %s26_s17, 0  ;;  %p37_p10 = scmp.eq.s32.totalorder %s1485_s21, 0 }
  0x40   : > { %p1878_p3 = scmp.eq.s32.totalorder %s1557_s22, 1  ;;  %p1258_p7 = scmp.lt.s32.totalorder %s1485_s21, 2 }
  0x41   : > { %s1662_s27 = scalar_select %p27_p6, %s1481_s20, %s29_s29  }
  0x42   : > { %p1656_p5 = por %p1878_p3, %p36_p13  ;;  %p38_p9 = por %p37_p10, %p36_p13 }
  0x43   : > { %s208_s30 = sand.u32 1, %s1481_s20   ;;  %s1095_s6 = sshll.u32 %s1485_s21, 6 }
  0x44   : > { %s1879_s23 = scalar_select %p1656_p5, 1, 0 }
  0x45   : > { %s1094_s7 = sshll.u32 %s208_s30, 2  ;;  %s1669_s8 = scalar_lea.hbm %s1865_s0, %s1095_s6 }
  0x46   : > { %s212_s9 = scalar_lea.vmem [#allocation2], %s1094_s7  ;;  %p1673_p11 = pnand %p1258_p7, %p38_p9 }
  0x47   : > { %s219_s10 = sshll.u32 %s212_s9, 4  ;;  %s209_s28 = scalar_lea.sflag [#allocation3], %s208_s30  ;;  %s1671_s10 = int_to_ptr.vmem [resolvable:$true] %s219_s10 }
  0x48   : > { %s1385_s12 = scalar_lea.hbm %s1669_s8, 64  ;;  %p1387_p0 = pneg %p1673_p11 }
  0x49   : > { %p1386_p12 = scmp.ne.s32.totalorder %s1669_s8, %s1385_s12  ;;  %s1390_s17 = scalar_lea.hbm %s1865_s0, 128 }
  0x4a   : > { %p1391_p13 = scmp.lt.u32.totalorder %s1669_s8, %s1865_s0  ;;  %p1392_p6 = scmp.lt.u32.totalorder %s1390_s17, %s1385_s12 }
  0x4b   : > { %p1388_p2 = pnand %p1387_p0, %p1386_p12  ;;  %p1394_p3 = scmp.lt.u32.totalorder %s1385_s12, %s1669_s8 }
  0x4c   : > { %p1393_p10 = por %p1392_p6, %p1391_p13 }
  0x4d   : > { %p1389_p1 = pneg %p1388_p2 }
  0x4e   : > { %p1395_p7 = por %p1394_p3, %p1393_p10 }
  0x50   : > { %p1396_p9 = pnand %p1395_p7, %p1389_p1 }
  0x52   : > { %1399 = shalt.err (!%p1396_p9)
}
  0x53   : > { %s1400_s30 = scalar_lea.vmem %s1671_s10, 64  ;;  %s1491_s15 = smov [#allocation2]  }
  0x54   : > { %p1401_p12 = scmp.ne.s32.totalorder %s1671_s10, %s1400_s30  ;;  %s1405_s16 = sshll.u32 %s1491_s15, 4  ;;  %s1406_s16 = int_to_ptr.vmem [resolvable:$false] %s1405_s16 }
  0x55   : > { %s1407_s9 = scalar_lea.vmem %s1406_s16, 128  ;;  %p1408_p4 = scmp.lt.s32.totalorder %s1671_s10, %s1406_s16 }
  0x56   : > { %p1403_p2 = pnand %p1401_p12, %p1387_p0  ;;  %p1409_p13 = scmp.lt.s32.totalorder %s1407_s9, %s1400_s30 }
  0x58   : > { %p1404_p5 = pneg %p1403_p2  ;;  %p1410_p6 = por %p1409_p13, %p1408_p4 }
  0x5a   : > { %p1411_p10 = pnand %p1410_p6, %p1404_p5 }
  0x5c   : > { %1414 = shalt.err (!%p1411_p10)
}
  0x5d   : > { %1251 = dma.hbm_to_vmem [thread:$0]  (!%p1673_p11), %s1669_s8, 64, %s1671_s10, %s209_s28  }
  0x5e   : > { %228 = sbr.rel (%p1576_p8) target bundleno = 2720 (0xaa0), region = 40  ;;  %s1705_s12 = sand.u32 (!%p1576_p8), 1, %s1477_s19  }
  0x5f   : > { %s1097_s13 = sshll.u32 (!%p1576_p8), %s1705_s12, 2  ;;  %s231_s29 = scalar_lea.sflag (!%p1576_p8), [#allocation3], %s1705_s12 }
  0x60   : > { %s234_s17 = scalar_lea.vmem (!%p1576_p8), [#allocation2], %s1097_s13  ;;  %p1881_p4 = scmp.ne.s32.totalorder (!%p1576_p8), %s1874_s24, 0 }
  0x65   : > { %1460 = dma.done.wait (%p1881_p4), %s231_s29, 64  }
  0x66   : > { %1462 = vsyncadd (%p1881_p4), %s231_s29, 4294967232  ;;  %p1882_p5 = scmp.eq.s32.totalorder %s1557_s22, 0 }
  0x68   : > { %1464 = dma.done.wait (%p1882_p5), [#allocation6], 512   ;;  %p1883_p11 = pmov %p1882_p5 }
  0x69   : > { %v1492_v0 = vmov 0.0   ;;  %vm1493_vm0 = vmmov 0   ;;  %v1311_v1 = vld [vmem:[#allocation5] sm:$0xff]   ;;  %v1312_v2 = vld [vmem:[#allocation5 + $0x8] sm:$0xff]   ;;  %v270_v3 = vld [vmem:[%s234_s17] sm:$0xf] }
  0x6a   : > { %1466 = vsyncadd (%p1883_p11), [#allocation6], 4294966784  ;;  %1149 = vmatprep.subr.bf16.mxu0 %v1492_v0  ;;  %1153 = vmatprep.mubr.msk.bf16.mxu0 %vm1493_vm0, %v1492_v0  ;;  %vm294_vm1 = vcmask 261120   ;;  %v1101_v4 = vld [vmem:[%s1867_s2] ss:$0 sm:$0xff]  ;;  %s1494_s8 = smov 96  }
  0x6b   : > { %1157 = vmatprep.subr.bf16.mxu1 %v1492_v0  ;;  %1159 = vmatprep.mubr.msk.bf16.mxu1 %vm1493_vm0, %v1492_v0  ;;  %s1495_s10 = smov 120   ;;  %s1496_s11 = smov 88   ;;  %vm344_vm2 = vcmask 64512   ;;  %vm408_vm3 = vcmask 1043456   ;;  %v453_v50 = vld [vmem:[#allocation7] sm:$0xf] }
  0x6c   : > { %1150 = vmatpush3.bf16.msra.mxu0 %v1311_v1  ;;  %s1497_s28 = smov 64   ;;  %s1498_s7 = smov 56   ;;  %v617_v51 = vsel %vm408_vm3, %v453_v50, 0  ;;  %v566_v52 = vld [vmem:[#allocation7 + $0x4] sm:$0xf] }
  0x6d   : > { %1151 = vmatprep.subr.bf16.mxu0 %v1492_v0  ;;  %s1499_s6 = smov 112   ;;  %s1500_s30 = smov 80   ;;  %v571_v53 = vsel %vm408_vm3, %v566_v52, 0 }
  0x6e   : > { %s1501_s15 = smov 72   ;;  %s1502_s16 = smov 104  }
  0x6f   : > { %s1503_s9 = smov 48   ;;  %s1504_s13 = smov 40  }
  0x70   : > { %1152 = vmatpush3.bf16.msra.mxu0 %v1312_v2  ;;  %s1100_s29 = sshll.u32 %s1705_s12, 3  ;;  %s1119_s26 = sshll.u32 %s1557_s22, 7 }
  0x71   : > { %1163 = vmatprep.subr.bf16.mxu0 %v1492_v0  ;;  %s987_s22 = scalar_lea.sflag [#allocation4], %s1705_s12  ;;  %p1884_p0 = scmp.ne.s32.totalorder %s1879_s23, 0 }
  0x73   : > { %1154 = vmatmul.mubr.msk.bf16.vlgmr.msra.gmra.mrb[0].mxu0 %vm294_vm1, %v270_v3 }
  0x74   : > { %1165 = vmatprep.mubr.msk.bf16.mxu0 %vm1493_vm0, %v1492_v0 }
 0x146   : > { %v332_v5 = vpop.f32.mrb[0].mxu0 }
 0x147   : > { %v333_v6 = vadd.f32 %v1101_v4, %v332_v5  ;;  %v1155_v7 = vpop.f32.mrb[1].mxu0 }
 0x148   : > { %v335_v8 = vpop.f32.mrb[2].mxu0 }
 0x149   : > { %v338_v9 = vmul.f32 0.35355338, %v333_v6  ;;  %v1731_v10 = vpack.c.bf16 %v333_v6, %v333_v6  ;;  %v1156_v11 = vpop.f32.mrb[3].mxu0 }
 0x14b   : > { %v1733_v12 = vpack.c.bf16 %v338_v9, %v338_v9  ;;  %342 = vrot.lane.b32.xlu0 %v1731_v10, %s1494_s8  ;;  %s268_s8 = scalar_lea.vmem [#allocation8], %s1100_s29 }
 0x14d   : > { %455 = vrot.lane.b32.xlu1 %v1733_v12, %s1495_s10  ;;  %s1000_s10 = sshll.u32 %s268_s8, 4  ;;  %s1822_s10 = int_to_ptr.vmem [resolvable:$true] %s1000_s10 }
 0x14f   : > { %457 = vrot.lane.b32.xlu0 %v1731_v10, %s1496_s11 }
 0x1bd   : > { %v343_v13 = vpop.permute.xlu0 %342 }
 0x1be   : > { %v349_v14 = vsel %vm344_vm2, %v343_v13, 0 }
 0x1bf   : > { %1158 = vmatpush3.bf16.xpose.msra.mxu1 %v349_v14  ;;  %v456_v17 = vpop.permute.xlu1 %455 }
 0x1c0   : > { %1169 = vmatprep.subr.bf16.mxu1 %v1492_v0 }
 0x1c1   : > { %v458_v15 = vpop.permute.xlu0 %457 }
 0x1c2   : > { %v463_v16 = vsel %vm344_vm2, %v458_v15, 0 }
 0x1c6   : > { %1160 = vmatmul.mubr.msk.bf16.vlgmr.msra.gmra.mrb[0].mxu1 %vm344_vm2, %v1733_v12 }
 0x1c7   : > { %1170 = vmatpush3.bf16.xpose.msra.mxu1 %v463_v16  ;;  %1171 = vmatprep.mubr.msk.bf16.mxu1 %vm1493_vm0, %v1492_v0 }
 0x1c8   : > { %1181 = vmatprep.subr.bf16.mxu1 %v1492_v0 }
 0x1ce   : > { %1172 = vmatmul.mubr.msk.bf16.vlgmr.msra.gmra.mrb[4].mxu1 %vm344_vm2, %v456_v17 }
 0x1cf   : > { %1183 = vmatprep.mubr.msk.bf16.mxu1 %vm1493_vm0, %v1492_v0  ;;  %1182 = vmatpush3.bf16.msra.mxu1 %v571_v53 }
 0x1d0   : > { %1193 = vmatprep.subr.bf16.mxu1 %v1492_v0 }
 0x299   : > { %v385_v18 = vpop.f32.mrb[0].mxu1 }
 0x29a   : > { %v1161_v19 = vpop.f32.mrb[1].mxu1  ;;  %v391_v20 = vsel %vm344_vm2, %v385_v18, -inf }
 0x29b   : > { %392 = vmax.xlane.f32.xlu1 %v391_v20  ;;  %v388_v21 = vpop.f32.mrb[2].mxu1 }
 0x29c   : > { %v1162_v22 = vpop.f32.mrb[3].mxu1 }
 0x2a1   : > { %v499_v23 = vpop.f32.mrb[4].mxu1 }
 0x2a2   : > { %v1173_v24 = vpop.f32.mrb[5].mxu1  ;;  %v505_v25 = vsel %vm344_vm2, %v499_v23, -inf }
 0x2a3   : > { %506 = vmax.xlane.f32.xlu0 %v505_v25  ;;  %v502_v26 = vpop.f32.mrb[6].mxu1 }
 0x2a4   : > { %v1174_v27 = vpop.f32.mrb[7].mxu1 }
 0x328   : > { %v393_v28 = vpop.xlane.xlu1 %392 }
 0x329   : > { %v394_v29 = vsub.f32 %v385_v18, %v393_v28 }
 0x32b   : > { %v395_v30 = vmul.f32 1.442695, %v394_v29 }
 0x32d   : > { %1313 = vpow2.f32 %v395_v30 }
 0x330   : > { %v507_v31 = vpop.xlane.xlu0 %506 }
 0x331   : > { %v508_v32 = vsub.f32 %v499_v23, %v507_v31 }
 0x333   : > { %v509_v33 = vmul.f32 1.442695, %v508_v32 }
 0x335   : > { %1315 = vpow2.f32 %v509_v33  ;;  %v770_v33 = vld [vmem:[#allocation7 + $0x8] sm:$0xf] }
 0x337   : > { %v1314_v34 = vpop.eup %1313 }
 0x338   : > { %v397_v35 = vsel %vm344_vm2, %v1314_v34, 0.0 }
 0x339   : > { %398 = vadd.xlane.f32.xlu0 %v397_v35 }
 0x33f   : > { %v1316_v36 = vpop.eup %1315 }
 0x340   : > { %v511_v37 = vsel %vm344_vm2, %v1316_v36, 0.0 }
 0x341   : > { %512 = vadd.xlane.f32.xlu1 %v511_v37 }
 0x34f   : > { %403 = vrot.lane.b32.xlu0 %v1731_v10, %s1497_s28 }
 0x352   : > { %517 = vrot.lane.b32.xlu1 %v1731_v10, %s1498_s7  ;;  %s1820_s7 = scalar_lea.hbm %s1870_s5, %s1119_s26 }
 0x353   : > { %659 = vrot.lane.b32.xlu0 %v1733_v12, %s1499_s6  ;;  %s1415_s6 = scalar_lea.vmem %s1822_s10, 128 }
 0x354   : > { %p1416_p8 = scmp.ne.s32.totalorder %s1822_s10, %s1415_s6 }
 0x356   : > { %661 = vrot.lane.b32.xlu1 %v1731_v10, %s1500_s30  ;;  %p1417_p1 = pnand %p1416_p8, %p1884_p0  ;;  %s1505_s30 = smov [#allocation8]  }
 0x358   : > { %p1418_p3 = pneg %p1417_p1 }
 0x3c6   : > { %v399_v38 = vpop.xlane.xlu0 %398 }
 0x3c7   : > { %1317 = vrcp.f32 %v399_v38 }
 0x3ca   : > { %v404_v39 = vpop.permute.xlu0 %403 }
 0x3cb   : > { %v410_v40 = vsel %vm408_vm3, %v404_v39, 0 }
 0x3cc   : > { %1164 = vmatpush3.bf16.msra.mxu0 %v410_v40 }
 0x3cd   : > { %1175 = vmatprep.subr.bf16.mxu0 %v1492_v0 }
 0x3ce   : > { %v513_v41 = vpop.xlane.xlu1 %512  ;;  %v660_v3 = vpop.permute.xlu0 %659 }
 0x3cf   : > { %1319 = vrcp.f32 %v513_v41 }
 0x3d1   : > { %v1318_v42 = vpop.eup %1317 }
 0x3d2   : > { %v401_v43 = vmul.f32 %v1318_v42, %v1314_v34  ;;  %v518_v44 = vpop.permute.xlu1 %517  ;;  %v775_v34 = vsel %vm408_vm3, %v770_v33, 0 }
 0x3d3   : > { %v523_v46 = vsel %vm408_vm3, %v518_v44, 0 }
 0x3d4   : > { %v402_v45 = vpack.c.bf16 %v401_v43, %v401_v43 }
 0x3d6   : > { %1166 = vmatmul.mubr.msk.bf16.vlgmr.msra.gmra.mrb[4].mxu0 %vm344_vm2, %v402_v45  ;;  %v662_v59 = vpop.permute.xlu1 %661 }
 0x3d7   : > { %1176 = vmatpush3.bf16.msra.mxu0 %v523_v46  ;;  %1177 = vmatprep.mubr.msk.bf16.mxu0 %vm1493_vm0, %v1492_v0  ;;  %v667_v1 = vsel %vm344_vm2, %v662_v59, 0 }
 0x3d8   : > { %1187 = vmatprep.subr.bf16.mxu0 %v1492_v0 }
 0x3d9   : > { %v1320_v47 = vpop.eup %1319 }
 0x3da   : > { %v515_v48 = vmul.f32 %v1320_v47, %v1316_v36 }
 0x3dc   : > { %v516_v49 = vpack.c.bf16 %v515_v48, %v515_v48 }
 0x3de   : > { %1178 = vmatmul.mubr.msk.bf16.vlgmr.msra.gmra.mrb[8].mxu0 %vm344_vm2, %v516_v49 }
 0x3df   : > { %1189 = vmatprep.mubr.msk.bf16.mxu0 %vm1493_vm0, %v1492_v0  ;;  %1188 = vmatpush3.bf16.msra.mxu0 %v617_v51  ;;  %v929_v51 = vld [vmem:[#allocation7 + $0xc] sm:$0xf] }
 0x3e0   : > { %1199 = vmatprep.subr.bf16.mxu0 %v1492_v0  ;;  %v934_v52 = vsel %vm408_vm3, %v929_v51, 0 }
 0x4a9   : > { %v446_v54 = vpop.f32.mrb[4].mxu0 }
 0x4aa   : > { %v452_v55 = vpack.c.bf16 %v446_v54, %v446_v54  ;;  %v1167_v56 = vpop.f32.mrb[5].mxu0 }
 0x4ab   : > { %v449_v57 = vpop.f32.mrb[6].mxu0 }
 0x4ac   : > { %v1168_v58 = vpop.f32.mrb[7].mxu0  ;;  %1190 = vmatmul.mubr.msk.bf16.vlgmr.msra.gmra.mrb[12].mxu0 %vm344_vm2, %v452_v55 }
 0x4ad   : > { %1201 = vmatprep.mubr.msk.bf16.mxu0 %vm1493_vm0, %v1492_v0 }
 0x4b1   : > { %v559_v60 = vpop.f32.mrb[8].mxu0 }
 0x4b2   : > { %v565_v61 = vpack.c.bf16 %v559_v60, %v559_v60  ;;  %v1179_v62 = vpop.f32.mrb[9].mxu0 }
 0x4b3   : > { %v562_v63 = vpop.f32.mrb[10].mxu0 }
 0x4b4   : > { %v1180_v2 = vpop.f32.mrb[11].mxu0  ;;  %1184 = vmatmul.mubr.msk.bf16.vlgmr.msra.gmra.mrb[8].mxu1 %vm344_vm2, %v565_v61 }
 0x4b5   : > { %1194 = vmatpush3.bf16.xpose.msra.mxu1 %v667_v1  ;;  %1195 = vmatprep.mubr.msk.bf16.mxu1 %vm1493_vm0, %v1492_v0 }
 0x4b6   : > { %1205 = vmatprep.subr.bf16.mxu1 %v1492_v0 }
 0x4bc   : > { %1196 = vmatmul.mubr.msk.bf16.vlgmr.msra.gmra.mrb[12].mxu1 %vm344_vm2, %v660_v3 }
 0x4bd   : > { %1207 = vmatprep.mubr.msk.bf16.mxu1 %vm1493_vm0, %v1492_v0  ;;  %1206 = vmatpush3.bf16.msra.mxu1 %v775_v34 }
 0x4be   : > { %1217 = vmatprep.subr.bf16.mxu1 %v1492_v0 }
 0x57f   : > { %v653_v4 = vpop.f32.mrb[12].mxu0 }
 0x580   : > { %v1191_v5 = vpop.f32.mrb[13].mxu0 }
 0x581   : > { %v656_v6 = vpop.f32.mrb[14].mxu0 }
 0x582   : > { %v1192_v7 = vpop.f32.mrb[15].mxu0 }
 0x587   : > { %v607_v8 = vpop.f32.mrb[8].mxu1 }
 0x588   : > { %v1782_v9 = vadd.f32 %v653_v4, %v607_v8  ;;  %v1185_v11 = vpop.f32.mrb[9].mxu1  ;;  %v1117_v4 = vld [vmem:[%s1869_s4] ss:$0 sm:$0xff] }
 0x589   : > { %v610_v13 = vpop.f32.mrb[10].mxu1 }
 0x58a   : > { %v1186_v14 = vpop.f32.mrb[11].mxu1 }
 0x58f   : > { %v703_v15 = vpop.f32.mrb[12].mxu1 }
 0x590   : > { %v1197_v16 = vpop.f32.mrb[13].mxu1  ;;  %v709_v17 = vsel %vm344_vm2, %v703_v15, -inf }
 0x591   : > { %710 = vmax.xlane.f32.xlu1 %v709_v17  ;;  %v706_v18 = vpop.f32.mrb[14].mxu1 }
 0x592   : > { %v1198_v19 = vpop.f32.mrb[15].mxu1 }
 0x5a2   : > { %820 = vrot.lane.b32.xlu1 %v1731_v10, %s1501_s15  ;;  %s1419_s15 = sshll.u32 %s1505_s30, 4  ;;  %s1420_s15 = int_to_ptr.vmem [resolvable:$false] %s1419_s15 }
 0x5a3   : > { %p1422_p7 = scmp.lt.s32.totalorder %s1822_s10, %s1420_s15 }
 0x5a6   : > { %818 = vrot.lane.b32.xlu1 %v1733_v12, %s1502_s16  ;;  %s1421_s16 = scalar_lea.vmem %s1420_s15, 256 }
 0x5a7   : > { %p1423_p9 = scmp.lt.s32.totalorder %s1421_s16, %s1415_s6 }
 0x5a9   : > { %p1424_p12 = por %p1423_p9, %p1422_p7 }
 0x5ab   : > { %p1425_p2 = pnand %p1424_p12, %p1418_p3 }
 0x61e   : > { %v711_v20 = vpop.xlane.xlu1 %710 }
 0x61f   : > { %v712_v21 = vsub.f32 %v703_v15, %v711_v20 }
 0x621   : > { %v713_v22 = vmul.f32 1.442695, %v712_v21 }
 0x622   : > { %v821_v29 = vpop.permute.xlu1 %820 }
 0x623   : > { %1321 = vpow2.f32 %v713_v22  ;;  %v826_v31 = vsel %vm344_vm2, %v821_v29, 0 }
 0x626   : > { %v819_v32 = vpop.permute.xlu1 %818 }
 0x62d   : > { %v1322_v23 = vpop.eup %1321 }
 0x62e   : > { %v715_v24 = vsel %vm344_vm2, %v1322_v23, 0.0 }
 0x62f   : > { %716 = vadd.xlane.f32.xlu0 %v715_v24 }
 0x645   : > { %721 = vrot.lane.b32.xlu0 %v1731_v10, %s1503_s9 }
 0x6bc   : > { %v717_v25 = vpop.xlane.xlu0 %716 }
 0x6bd   : > { %1323 = vrcp.f32 %v717_v25 }
 0x6c0   : > { %v722_v26 = vpop.permute.xlu0 %721 }
 0x6c1   : > { %v727_v27 = vsel %vm408_vm3, %v722_v26, 0 }
 0x6c2   : > { %1200 = vmatpush3.bf16.msra.mxu0 %v727_v27 }
 0x6c3   : > { %1211 = vmatprep.subr.bf16.mxu0 %v1492_v0 }
 0x6c7   : > { %v1324_v12 = vpop.eup %1323 }
 0x6c8   : > { %v719_v28 = vmul.f32 %v1324_v12, %v1322_v23 }
 0x6ca   : > { %v720_v30 = vpack.c.bf16 %v719_v28, %v719_v28 }
 0x6cc   : > { %1202 = vmatmul.mubr.msk.bf16.vlgmr.msra.gmra.mrb[16].mxu0 %vm344_vm2, %v720_v30 }
 0x6cd   : > { %1212 = vmatpush3.bf16.xpose.msra.mxu0 %v826_v31  ;;  %1213 = vmatprep.mubr.msk.bf16.mxu0 %vm1493_vm0, %v1492_v0 }
 0x6ce   : > { %1223 = vmatprep.subr.bf16.mxu0 %v1492_v0 }
 0x6d4   : > { %1214 = vmatmul.mubr.msk.bf16.vlgmr.msra.gmra.mrb[20].mxu0 %vm344_vm2, %v819_v32 }
 0x6d5   : > { %1225 = vmatprep.mubr.msk.bf16.mxu0 %vm1493_vm0, %v1492_v0  ;;  %1224 = vmatpush3.bf16.msra.mxu0 %v934_v52 }
 0x79f   : > { %v763_v35 = vpop.f32.mrb[16].mxu0 }
 0x7a0   : > { %v769_v36 = vpack.c.bf16 %v763_v35, %v763_v35  ;;  %v1203_v37 = vpop.f32.mrb[17].mxu0 }
 0x7a1   : > { %v766_v38 = vpop.f32.mrb[18].mxu0 }
 0x7a2   : > { %v1204_v39 = vpop.f32.mrb[19].mxu0  ;;  %1208 = vmatmul.mubr.msk.bf16.vlgmr.msra.gmra.mrb[16].mxu1 %vm344_vm2, %v769_v36 }
 0x7a3   : > { %1219 = vmatprep.mubr.msk.bf16.mxu1 %vm1493_vm0, %v1492_v0 }
 0x7a7   : > { %v862_v40 = vpop.f32.mrb[20].mxu0 }
 0x7a8   : > { %v1215_v41 = vpop.f32.mrb[21].mxu0  ;;  %v868_v42 = vsel %vm344_vm2, %v862_v40, -inf }
 0x7a9   : > { %869 = vmax.xlane.f32.xlu0 %v868_v42  ;;  %v865_v43 = vpop.f32.mrb[22].mxu0 }
 0x7aa   : > { %v1216_v44 = vpop.f32.mrb[23].mxu0 }
 0x7bf   : > { %880 = vrot.lane.b32.xlu0 %v1731_v10, %s1504_s13 }
 0x836   : > { %v870_v45 = vpop.xlane.xlu0 %869 }
 0x837   : > { %v871_v46 = vsub.f32 %v862_v40, %v870_v45 }
 0x839   : > { %v872_v47 = vmul.f32 1.442695, %v871_v46 }
 0x83a   : > { %v881_v48 = vpop.permute.xlu0 %880 }
 0x83b   : > { %1325 = vpow2.f32 %v872_v47  ;;  %v886_v49 = vsel %vm408_vm3, %v881_v48, 0 }
 0x83c   : > { %1218 = vmatpush3.bf16.msra.mxu1 %v886_v49 }
 0x845   : > { %v1326_v50 = vpop.eup %1325 }
 0x846   : > { %v874_v0 = vsel %vm344_vm2, %v1326_v50, 0.0 }
 0x847   : > { %875 = vadd.xlane.f32.xlu1 %v874_v0 }
 0x875   : > { %v811_v53 = vpop.f32.mrb[16].mxu1 }
 0x876   : > { %v817_v54 = vadd.f32 %v811_v53, %v1782_v9  ;;  %v1209_v10 = vpop.f32.mrb[17].mxu1 }
 0x877   : > { %v814_v55 = vpop.f32.mrb[18].mxu1 }
 0x878   : > { %v1210_v56 = vpop.f32.mrb[19].mxu1 }
 0x8d4   : > { %v876_v57 = vpop.xlane.xlu1 %875 }
 0x8d5   : > { %1327 = vrcp.f32 %v876_v57 }
 0x8df   : > { %v1328_v58 = vpop.eup %1327 }
 0x8e0   : > { %v878_v59 = vmul.f32 %v1328_v58, %v1326_v50 }
 0x8e2   : > { %v879_v60 = vpack.c.bf16 %v878_v59, %v878_v59 }
 0x8e4   : > { %1220 = vmatmul.mubr.msk.bf16.vlgmr.msra.gmra.mrb[20].mxu1 %vm344_vm2, %v879_v60 }
 0x9b7   : > { %v922_v61 = vpop.f32.mrb[20].mxu1 }
 0x9b8   : > { %v928_v62 = vpack.c.bf16 %v922_v61, %v922_v61  ;;  %v1221_v63 = vpop.f32.mrb[21].mxu1 }
 0x9b9   : > { %v925_v1 = vpop.f32.mrb[22].mxu1 }
 0x9ba   : > { %v1222_v2 = vpop.f32.mrb[23].mxu1  ;;  %1226 = vmatmul.mubr.msk.bf16.vlgmr.msra.gmra.mrb[24].mxu0 %vm344_vm2, %v928_v62 }
 0xa8d   : > { %v970_v3 = vpop.f32.mrb[24].mxu0 }
 0xa8e   : > { %v976_v5 = vadd.f32 %v970_v3, %v817_v54  ;;  %v1227_v6 = vpop.f32.mrb[25].mxu0 }
 0xa8f   : > { %v973_v7 = vpop.f32.mrb[26].mxu0 }
 0xa90   : > { %v984_v8 = vadd.f32 %v1117_v4, %v976_v5  ;;  %v1228_v9 = vpop.f32.mrb[27].mxu0 }
 0xa92   : > { %985 = vst.msk [vmem:[%s268_s8] sm:$0xff] %vm294_vm1, %v984_v8 }
 0xa93   : > { %1428 = shalt.err (!%p1425_p2)
}
 0xa94   : > { %s1429_s12 = scalar_lea.hbm %s1820_s7, 128  ;;  %s1433_s29 = scalar_lea.hbm %s1870_s5, 256 }
 0xa95   : > { %p1430_p13 = scmp.ne.s32.totalorder %s1820_s7, %s1429_s12  ;;  %p1434_p4 = scmp.lt.u32.totalorder %s1820_s7, %s1870_s5 }
 0xa96   : > { %p1435_p5 = scmp.lt.u32.totalorder %s1433_s29, %s1429_s12  ;;  %p1437_p8 = scmp.lt.u32.totalorder %s1429_s12, %s1820_s7 }
 0xa97   : > { %p1431_p6 = pnand %p1430_p13, %p1884_p0 }
 0xa98   : > { %p1436_p11 = por %p1435_p5, %p1434_p4 }
 0xa99   : > { %p1432_p10 = pneg %p1431_p6 }
 0xa9a   : > { %p1438_p1 = por %p1437_p8, %p1436_p11 }
 0xa9c   : > { %p1439_p3 = pnand %p1438_p1, %p1432_p10 }
 0xa9e   : > { %1442 = shalt.err (!%p1439_p3)
}
 0xa9f   : > { %1239 = dma.vmem_to_hbm [thread:$0]  (%p1884_p0), %s1822_s10, 128, %s1820_s7, %s987_s22  }
 0xaa0 PF: > { %s1012_s26 = sand.u32 1, %s1473_s18   ;;  %p1885_p7 = scmp.ne.s32.totalorder %s1875_s25, 0 }
 0xaa1   : > { %p1886_p9 = scmp.ge.s32.totalorder %s1485_s21, 2  ;;  %s1013_s8 = scalar_lea.sflag [#allocation4], %s1012_s26 }
 0xaa3   : > { %p1253_p12 = pnand %p1886_p9, %p1885_p7 }
 0xaa5   : > { %1468 = dma.done.wait (!%p1253_p12), %s1013_s8, 128  }
 0xaa6   : > { %1470 = vsyncadd (!%p1253_p12), %s1013_s8, 4294967168  ;;  %p19_p2 = scmp.ge.s32.totalorder %s1646_s14, 4   ;;  %s1887_s18 = smov %s1477_s19 }
 0xaa7   : > { %s1888_s19 = smov %s1481_s20  ;;  %s1889_s20 = smov %s1662_s27 }
 0xaa8   : > { %s1890_s21 = smov %s1646_s14  ;;  %21 = sbr.rel (!%p19_p2) target bundleno = 6 (0x6), region = 93 }
 0xaaf   :  { %1018 = vsyncpa [#allocation3], 1 }
 0xab0   :  { %1020 = vsyncpa [#allocation3 + $0x1], 1 }
 0xab1   :  { %1021 = vsyncpa [#allocation6], 1 }
 0xab2   :  { %1022 = vsyncpa [#allocation4], 1 }
 0xab3   :  { %1024 = vsyncpa [#allocation4 + $0x1], 1 }

</bundles_post_ra>
